<compile_context>
chip_gen: v6e
topology: v6e:2x2x1
jax: 0.10.0
libtpu: 0.0.40
codegen_flags: <defaults>
</compile_context>

<pallas_src>
import functools

import jax
import jax.numpy as jnp
from jax import lax
from jax.experimental import pallas as pl
from jax.experimental.pallas import tpu as pltpu


# --------------------------------------------------------------------------
# Helpers
# --------------------------------------------------------------------------
def _pick_tile(n, preferred, min_multiple=8):
    """Largest power-of-two tile <= preferred that divides n.

    `min_multiple` keeps second-minor dims sublane-aligned (8 for 4-byte
    dtypes, 16 for bf16).  Falls back to any aligned divisor, then the full
    extent (caller budget-checks the result).
    """
    if n <= preferred:
        return n
    t = preferred
    while t >= min_multiple:
        if n % t == 0:
            return t
        t //= 2
    for t in range(preferred, min_multiple - 1, -1):
        if n % t == 0 and t % min_multiple == 0:
            return t
    return n  # full extent fallback


def _vmem_limit_bytes():
    """Generation-aware scoped-VMEM limit (~5/8 of physical capacity)."""
    cap = 64 * 1024 * 1024  # conservative default (v7x physical VMEM)
    try:
        info = pltpu.get_tpu_info()
        cap = int(getattr(info, "vmem_capacity_bytes", cap))
    except Exception:
        pass
    return int(min(cap * 5 // 8, 96 * 1024 * 1024))


def _invariant_spec(block_shape, index_map):
    """BlockSpec for a grid-invariant operand; single-buffered when supported
    (halves the resident weight footprint vs default double-buffering)."""
    if hasattr(pl, "Buffered"):
        try:
            return pl.BlockSpec(block_shape, index_map,
                                pipeline_mode=pl.Buffered(1))
        except Exception:
            pass
    return pl.BlockSpec(block_shape, index_map)


# --------------------------------------------------------------------------
# Kernel 1: QKV projection (column-tiled weights; Q pre-scaled via weights).
# --------------------------------------------------------------------------
def _qkv_proj_kernel(x_ref, wq_ref, wk_ref, wv_ref, q_ref, k_ref, v_ref):
    x = x_ref[...]                                          # (tr, DIM)
    q_ref[...] = jnp.dot(x, wq_ref[...],
                         preferred_element_type=jnp.float32).astype(q_ref.dtype)
    k_ref[...] = jnp.dot(x, wk_ref[...],
                         preferred_element_type=jnp.float32).astype(k_ref.dtype)
    v_ref[...] = jnp.dot(x, wv_ref[...],
                         preferred_element_type=jnp.float32).astype(v_ref.dtype)


# --------------------------------------------------------------------------
# Kernel 2: flash attention (base-2 online softmax) + fused output projection.
# --------------------------------------------------------------------------
def _flash_attn_kernel(q_ref, k_ref, v_ref, wout_ref, bout_ref, o_ref,
                       m_scr, l_scr, acc_scr, *, heads, dim_head):
    kv = pl.program_id(2)

    @pl.when(kv == 0)
    def _init():
        m_scr[...] = jnp.full_like(m_scr, -jnp.inf)
        l_scr[...] = jnp.zeros_like(l_scr)
        acc_scr[...] = jnp.zeros_like(acc_scr)

    q = q_ref[0]                                            # (tq, INNER); scale*log2e folded in
    k = k_ref[0]                                            # (tk, INNER)
    v = v_ref[0]                                            # (tk, INNER)

    # Static unroll over heads: each iteration flushes its results to the
    # per-head VMEM scratch slices, which bounds vreg live ranges; heads is a
    # small compile-time constant for this module.
    # TODO(synk): switch to lax.fori_loop over heads when heads is large and
    # dim_head % 128 == 0 (unaligned dynamic lane slices are expensive on TPU).
    for h in range(heads):
        sl = slice(h * dim_head, (h + 1) * dim_head)        # static, lane-contiguous
        q_h = q[:, sl]                                      # (tq, D)
        k_h = k[:, sl]                                      # (tk, D)
        v_h = v[:, sl]                                      # (tk, D)

        # s = q_h @ k_h^T (contraction over D, no explicit transpose); base-2 logits.
        s = lax.dot_general(q_h, k_h, (((1,), (1,)), ((), ())),
                            preferred_element_type=jnp.float32)   # (tq, tk) f32

        m_prev = m_scr[h]                                   # (tq, 1)
        l_prev = l_scr[h]                                   # (tq, 1)
        m_new = jnp.maximum(m_prev, jnp.max(s, axis=-1, keepdims=True))
        alpha = jnp.exp2(m_prev - m_new)                    # (tq, 1)
        p = jnp.exp2(s - m_new)                             # (tq, tk) f32

        l_scr[h] = alpha * l_prev + jnp.sum(p, axis=-1, keepdims=True)
        acc_scr[h] = alpha * acc_scr[h] + jnp.dot(
            p.astype(v_h.dtype), v_h, preferred_element_type=jnp.float32)
        m_scr[h] = m_new

    @pl.when(kv == pl.num_programs(2) - 1)
    def _finalize():
        tq = o_ref.shape[1]
        dim = o_ref.shape[2]
        res = jnp.zeros((tq, dim), jnp.float32)
        for h in range(heads):
            inv_l = 1.0 / l_scr[h]                          # exact; runs once per (b,q) tile
            o_h = (acc_scr[h] * inv_l).astype(wout_ref.dtype)     # (tq, D)
            # Per-head output projection: sublane-aligned weight row slice.
            res = res + jnp.dot(o_h, wout_ref[h * dim_head:(h + 1) * dim_head, :],
                                preferred_element_type=jnp.float32)
        res = res + bout_ref[...].astype(jnp.float32)
        o_ref[0] = res.astype(o_ref.dtype)


# --------------------------------------------------------------------------
# Wrapper
# --------------------------------------------------------------------------
def attention_pallas(x, w_qkv, w_out, b_out, *, heads, dim_head,
                     q_tile=256, kv_tile=512, row_tile=256, col_tile=512,
                     compute_dtype=None):
    b, n, dim = x.shape
    inner = heads * dim_head
    assert w_qkv.shape == (dim, 3 * inner)
    assert w_out.shape == (inner, dim)
    assert b_out.shape == (dim,)
    # TODO(synk): the heads==1 and dim_head==dim case (project_out=False ->
    # nn.Identity) is not specialized; pass identity w_out / zero b_out there.

    out_dtype = x.dtype
    cdt = jnp.dtype(compute_dtype) if compute_dtype is not None else jnp.dtype(x.dtype)
    if x.dtype != cdt:
        x = x.astype(cdt)
    w_qkv = w_qkv.astype(cdt)
    w_out = w_out.astype(cdt)
    b_out = b_out.astype(cdt)
    itemsize = cdt.itemsize
    out_itemsize = jnp.dtype(out_dtype).itemsize
    sub_mult = 8 if itemsize >= 4 else (16 if itemsize == 2 else 32)

    vmem_limit = _vmem_limit_bytes()

    # Fold (1/sqrt(d)) * log2(e) into the Q projection weights (done once, in
    # f32) so the attention kernel can run the online softmax with exp2.
    log2e = 1.4426950408889634
    scale = dim_head ** (-0.5)
    w_q = (w_qkv[:, :inner].astype(jnp.float32) * (scale * log2e)).astype(cdt)
    w_k = w_qkv[:, inner:2 * inner]
    w_v = w_qkv[:, 2 * inner:]
    b_out2 = b_out.reshape(1, dim)

    # ---------------- Kernel 1: QKV projection ----------------
    rows = b * n
    tr = _pick_tile(rows, row_tile, sub_mult)
    tc = _pick_tile(inner, col_tile, 128)
    num_r = rows // tr
    num_c = inner // tc
    x2 = x.reshape(rows, dim)
    # TODO(synk): for very large `dim` add a reduction grid axis (pl.when-
    # initialized accumulator) instead of keeping the full contraction in VMEM.

    qkv_cost = pl.CostEstimate(
        flops=2 * rows * dim * 3 * inner,
        transcendentals=0,
        bytes_accessed=(rows * dim + 3 * dim * inner + 3 * rows * inner) * itemsize,
    )

    q2, k2, v2 = pl.pallas_call(
        _qkv_proj_kernel,
        out_shape=(
            jax.ShapeDtypeStruct((rows, inner), cdt),
            jax.ShapeDtypeStruct((rows, inner), cdt),
            jax.ShapeDtypeStruct((rows, inner), cdt),
        ),
        grid_spec=pltpu.PrefetchScalarGridSpec(
            num_scalar_prefetch=0,
            grid=(num_r, num_c),
            in_specs=[
                pl.BlockSpec((tr, dim), lambda i, j: (i, 0)),
                pl.BlockSpec((dim, tc), lambda i, j: (0, j)),
                pl.BlockSpec((dim, tc), lambda i, j: (0, j)),
                pl.BlockSpec((dim, tc), lambda i, j: (0, j)),
            ],
            out_specs=(
                pl.BlockSpec((tr, tc), lambda i, j: (i, j)),
                pl.BlockSpec((tr, tc), lambda i, j: (i, j)),
                pl.BlockSpec((tr, tc), lambda i, j: (i, j)),
            ),
        ),
        compiler_params=pltpu.CompilerParams(
            dimension_semantics=("parallel", "parallel"),
            vmem_limit_bytes=vmem_limit,
        ),
        cost_estimate=qkv_cost,
    )(x2, w_q, w_k, w_v)

    q3 = q2.reshape(b, n, inner)
    k3 = k2.reshape(b, n, inner)
    v3 = v2.reshape(b, n, inner)
    # TODO(synk): for HBM-bound cases (v7x, long n, small dim_head) fuse the
    # K/V projection per kv tile into kernel 2 (pltpu.emit_pipeline) to avoid
    # the q/k/v HBM round trip entirely.

    # ---------------- Kernel 2: flash attention ----------------
    tq = _pick_tile(n, q_tile, sub_mult)
    tk = _pick_tile(n, kv_tile, sub_mult)

    lane = 128
    pad_d = -(-dim_head // lane) * lane

    def attn_vmem_estimate(tq_, tk_):
        blocks = 2 * (tq_ * inner + 2 * tk_ * inner) * itemsize   # q + k + v (double-buffered)
        weights = (inner * dim + dim) * itemsize                  # w_out + b_out (single-buffered)
        outb = 2 * tq_ * dim * out_itemsize
        scratch = heads * tq_ * (pad_d + 2 * lane) * 4            # acc + m + l (f32, lane-padded)
        return blocks + weights + outb + scratch

    budget = int(vmem_limit * 0.8)
    min_tile = max(sub_mult, 128)
    while attn_vmem_estimate(tq, tk) > budget and tk % 2 == 0 and tk // 2 >= min_tile:
        tk //= 2
    while attn_vmem_estimate(tq, tk) > budget and tq % 2 == 0 and tq // 2 >= min_tile:
        tq //= 2

    num_q = n // tq
    num_kv = n // tk
    # Megacore note: (b, num_q) are both "parallel"; b*num_q >= 2 keeps both
    # TensorCores busy on v7x.

    attn_cost = pl.CostEstimate(
        flops=4 * b * heads * n * n * dim_head + 2 * b * n * inner * dim,
        transcendentals=b * heads * n * n,
        bytes_accessed=(b * n * inner                      # Q
                        + 2 * b * n * inner * num_q        # K, V re-streamed per q tile
                        + inner * dim + dim) * itemsize
                       + b * n * dim * out_itemsize,
    )

    kernel = functools.partial(_flash_attn_kernel, heads=heads, dim_head=dim_head)

    out = pl.pallas_call(
        kernel,
        out_shape=jax.ShapeDtypeStruct((b, n, dim), out_dtype),
        grid_spec=pltpu.PrefetchScalarGridSpec(
            num_scalar_prefetch=0,
            grid=(b, num_q, num_kv),
            in_specs=[
                pl.BlockSpec((1, tq, inner), lambda bi, qi, ki: (bi, qi, 0)),
                pl.BlockSpec((1, tk, inner), lambda bi, qi, ki: (bi, ki, 0)),
                pl.BlockSpec((1, tk, inner), lambda bi, qi, ki: (bi, ki, 0)),
                _invariant_spec((inner, dim), lambda bi, qi, ki: (0, 0)),
                _invariant_spec((1, dim), lambda bi, qi, ki: (0, 0)),
            ],
            out_specs=pl.BlockSpec((1, tq, dim), lambda bi, qi, ki: (bi, qi, 0)),
            scratch_shapes=[
                pltpu.VMEM((heads, tq, 1), jnp.float32),          # running max (base-2)
                pltpu.VMEM((heads, tq, 1), jnp.float32),          # running sum
                pltpu.VMEM((heads, tq, dim_head), jnp.float32),   # per-head f32 accumulator
            ],
        ),
        compiler_params=pltpu.CompilerParams(
            dimension_semantics=("parallel", "parallel", "arbitrary"),
            vmem_limit_bytes=vmem_limit,
        ),
        cost_estimate=attn_cost,
    )(q3, k3, v3, w_out, b_out2)

    return out


# --------------------------------------------------------------------------
# Pure-JAX reference mirroring the PyTorch forward.
# --------------------------------------------------------------------------
def attention_reference(x, w_qkv, w_out, b_out, *, heads, dim_head):
    b, n, dim = x.shape
    inner = heads * dim_head
    scale = dim_head ** (-0.5)
    qkv = x @ w_qkv
    q, k, v = jnp.split(qkv, 3, axis=-1)

    def to_heads(t):
        return t.reshape(b, n, heads, dim_head).transpose(0, 2, 1, 3)

    q, k, v = map(to_heads, (q, k, v))
    dots = jnp.einsum('bhid,bhjd->bhij', q, k) * scale
    attn = jax.nn.softmax(dots, axis=-1)
    out = jnp.einsum('bhij,bhjd->bhid', attn, v)
    out = out.transpose(0, 2, 1, 3).reshape(b, n, inner)
    return out @ w_out + b_out


if __name__ == "__main__":
    # Small, module-consistent shapes.
    B, N, DIM = 2, 8, 32
    HEADS, DIM_HEAD = 2, 16
    INNER = HEADS * DIM_HEAD  # project_out is True (heads != 1)

    key = jax.random.PRNGKey(0)
    kx, kqkv, kwo, kbo = jax.random.split(key, 4)

    x = jax.random.normal(kx, (B, N, DIM), dtype=jnp.float32)
    w_qkv = jax.random.normal(kqkv, (DIM, 3 * INNER), dtype=jnp.float32) * 0.05
    w_out = jax.random.normal(kwo, (INNER, DIM), dtype=jnp.float32) * 0.05
    b_out = jax.random.normal(kbo, (DIM,), dtype=jnp.float32) * 0.05

    y = attention_pallas(x, w_qkv, w_out, b_out, heads=HEADS, dim_head=DIM_HEAD)
    y = jax.block_until_ready(y)

    y_ref = attention_reference(x, w_qkv, w_out, b_out, heads=HEADS, dim_head=DIM_HEAD)
    assert y.shape == (B, N, DIM)
    assert jnp.allclose(y, y_ref, atol=2e-3, rtol=2e-3), "mismatch vs reference"

    print("KERNEL_OK")
</pallas_src>

<mosaic_0001>
module attributes {stable_mosaic.version = 11 : i64} {
  func.func @_qkv_proj_kernel(%arg0: i32, %arg1: i32, %arg2: memref<16x32xf32, #tpu.memory_space<vmem>>, %arg3: memref<32x32xf32, #tpu.memory_space<vmem>>, %arg4: memref<32x32xf32, #tpu.memory_space<vmem>>, %arg5: memref<32x32xf32, #tpu.memory_space<vmem>>, %arg6: memref<16x32xf32, #tpu.memory_space<vmem>>, %arg7: memref<16x32xf32, #tpu.memory_space<vmem>>, %arg8: memref<16x32xf32, #tpu.memory_space<vmem>>) attributes {dimension_semantics = [#tpu.dimension_semantics<parallel>, #tpu.dimension_semantics<parallel>], iteration_bounds = array<i64: 1, 1>, scalar_prefetch = 0 : i64, scratch_operands = 0 : i64, tpu.core_type = #tpu.core_type<tc>, window_params = [{transform_indices = @transform_0, window_bounds = array<i64: 16, 32>}, {transform_indices = @transform_1, window_bounds = array<i64: 32, 32>}, {transform_indices = @transform_2, window_bounds = array<i64: 32, 32>}, {transform_indices = @transform_3, window_bounds = array<i64: 32, 32>}, {transform_indices = @transform_4, window_bounds = array<i64: 16, 32>}, {transform_indices = @transform_5, window_bounds = array<i64: 16, 32>}, {transform_indices = @transform_6, window_bounds = array<i64: 16, 32>}]} {
    %c0 = arith.constant 0 : index
    %c0_0 = arith.constant 0 : index
    %0 = vector.load %arg2[%c0, %c0_0] : memref<16x32xf32, #tpu.memory_space<vmem>>, vector<16x32xf32>
    %c0_1 = arith.constant 0 : index
    %c0_2 = arith.constant 0 : index
    %1 = vector.load %arg3[%c0_1, %c0_2] : memref<32x32xf32, #tpu.memory_space<vmem>>, vector<32x32xf32>
    %cst = arith.constant dense<0.000000e+00> : vector<16x32xf32>
    %2 = tpu.matmul %0, %1, %cst {dimension_numbers = #tpu.dot_dimension_numbers<[1], [0], [0], [1], [0, 0, 1, 1], [], []>} : vector<16x32xf32>, vector<32x32xf32>, vector<16x32xf32> -> vector<16x32xf32>
    %c0_3 = arith.constant 0 : index
    %c0_4 = arith.constant 0 : index
    %3 = vector.load %arg6[%c0_3, %c0_4] : memref<16x32xf32, #tpu.memory_space<vmem>>, vector<16x32xf32>
    tpu.vector_store %arg6[%c0_3, %c0_4], %2 {strides = array<i32>} : memref<16x32xf32, #tpu.memory_space<vmem>>, vector<16x32xf32>,
    %c0_5 = arith.constant 0 : index
    %c0_6 = arith.constant 0 : index
    %4 = vector.load %arg4[%c0_5, %c0_6] : memref<32x32xf32, #tpu.memory_space<vmem>>, vector<32x32xf32>
    %cst_7 = arith.constant dense<0.000000e+00> : vector<16x32xf32>
    %5 = tpu.matmul %0, %4, %cst_7 {dimension_numbers = #tpu.dot_dimension_numbers<[1], [0], [0], [1], [0, 0, 1, 1], [], []>} : vector<16x32xf32>, vector<32x32xf32>, vector<16x32xf32> -> vector<16x32xf32>
    %c0_8 = arith.constant 0 : index
    %c0_9 = arith.constant 0 : index
    %6 = vector.load %arg7[%c0_8, %c0_9] : memref<16x32xf32, #tpu.memory_space<vmem>>, vector<16x32xf32>
    tpu.vector_store %arg7[%c0_8, %c0_9], %5 {strides = array<i32>} : memref<16x32xf32, #tpu.memory_space<vmem>>, vector<16x32xf32>,
    %c0_10 = arith.constant 0 : index
    %c0_11 = arith.constant 0 : index
    %7 = vector.load %arg5[%c0_10, %c0_11] : memref<32x32xf32, #tpu.memory_space<vmem>>, vector<32x32xf32>
    %cst_12 = arith.constant dense<0.000000e+00> : vector<16x32xf32>
    %8 = tpu.matmul %0, %7, %cst_12 {dimension_numbers = #tpu.dot_dimension_numbers<[1], [0], [0], [1], [0, 0, 1, 1], [], []>} : vector<16x32xf32>, vector<32x32xf32>, vector<16x32xf32> -> vector<16x32xf32>
    %c0_13 = arith.constant 0 : index
    %c0_14 = arith.constant 0 : index
    %9 = vector.load %arg8[%c0_13, %c0_14] : memref<16x32xf32, #tpu.memory_space<vmem>>, vector<16x32xf32>
    tpu.vector_store %arg8[%c0_13, %c0_14], %8 {strides = array<i32>} : memref<16x32xf32, #tpu.memory_space<vmem>>, vector<16x32xf32>,
    return
  }
  func.func @transform_0(%arg0: i32, %arg1: i32) -> (i32, i32) {
    %c0_i32 = arith.constant 0 : i32
    %c0_i32_0 = arith.constant 0 : i32
    return %arg0, %c0_i32 : i32, i32
  }
  func.func @transform_1(%arg0: i32, %arg1: i32) -> (i32, i32) {
    %c0_i32 = arith.constant 0 : i32
    %c0_i32_0 = arith.constant 0 : i32
    return %c0_i32, %arg1 : i32, i32
  }
  func.func @transform_2(%arg0: i32, %arg1: i32) -> (i32, i32) {
    %c0_i32 = arith.constant 0 : i32
    %c0_i32_0 = arith.constant 0 : i32
    return %c0_i32, %arg1 : i32, i32
  }
  func.func @transform_3(%arg0: i32, %arg1: i32) -> (i32, i32) {
    %c0_i32 = arith.constant 0 : i32
    %c0_i32_0 = arith.constant 0 : i32
    return %c0_i32, %arg1 : i32, i32
  }
  func.func @transform_4(%arg0: i32, %arg1: i32) -> (i32, i32) {
    %c0_i32 = arith.constant 0 : i32
    return %arg0, %arg1 : i32, i32
  }
  func.func @transform_5(%arg0: i32, %arg1: i32) -> (i32, i32) {
    %c0_i32 = arith.constant 0 : i32
    return %arg0, %arg1 : i32, i32
  }
  func.func @transform_6(%arg0: i32, %arg1: i32) -> (i32, i32) {
    %c0_i32 = arith.constant 0 : i32
    return %arg0, %arg1 : i32, i32
  }
}

</mosaic_0001>

<bundles_post_ra>
// kernel: tpu_custom_call.1
= control target key start
LH: loop header
LB: loop body
LE: loop exit
PB: predicated region body
PF: predicated region fallthrough
CT: control target
= control target key end

     0   :  { %12 = vsyncpa [#allocation3], 0  ;;  %s693_s0 = inlined_call_operand.hbm [shape: f32[16,32], index: 0, kind: input, shape index: {}]   ;;  %s694_s1 = inlined_call_operand.hbm [shape: f32[32,32], index: 1, kind: input, shape index: {}]   ;;  %s695_s2 = inlined_call_operand.hbm [shape: f32[32,32], index: 2, kind: input, shape index: {}]   ;;  %s696_s3 = inlined_call_operand.hbm [shape: f32[32,32], index: 3, kind: input, shape index: {}]   ;;  %s697_s4 = inlined_call_operand.hbm [shape: f32[16,32], index: 4, kind: output, shape index: {0}]   ;;  %s698_s5 = inlined_call_operand.hbm [shape: f32[16,32], index: 5, kind: output, shape index: {1}]   ;;  %s699_s6 = inlined_call_operand.hbm [shape: f32[16,32], index: 6, kind: output, shape index: {2}]  }
   0x1   :  { %13 = vsyncpa [#allocation6], 0 }
   0x2   :  { %14 = vsyncpa [#allocation9], 0 }
   0x3   :  { %15 = vsyncpa [#allocation4], 0 }
   0x4   :  { %16 = vsyncpa [#allocation12], 0  ;;  %s595_s21 = smov [#allocation5]   ;;  %s596_s23 = smov [#allocation2]  }
   0x5   :  { %s34_s22 = sshll.u32 %s595_s21, 4  ;;  %s22_s24 = sshll.u32 %s596_s23, 4  ;;  %s35_s22 = int_to_ptr.vmem [resolvable:$true] %s34_s22  ;;  %s23_s24 = int_to_ptr.vmem [resolvable:$true] %s22_s24 }
   0x6   :  { %s453_s25 = scalar_lea.vmem %s35_s22, 512  ;;  %p458_p1 = scmp.lt.s32.totalorder %s35_s22, %s35_s22 }
   0x7   :  { %p454_p0 = scmp.ne.s32.totalorder %s35_s22, %s453_s25  ;;  %p459_p2 = scmp.lt.s32.totalorder %s453_s25, %s453_s25 }
   0x9   :  { %p460_p3 = por %p459_p2, %p458_p1 }
   0xb   :  { %p461_p4 = pnand %p460_p3, %p454_p0 }
   0xd   :  { %464 = shalt.err (!%p461_p4)
}
   0xe   :  { %s597_s26 = smov 128   ;;  %s598_s27 = smov 8  }
   0xf   :  { %40 = dma.hbm_to_vmem [thread:$0]  %s694_s1, 512, %s35_s22, [#allocation6], %s597_s26, %s597_s26, %s598_s27  }
  0x10   :  { %s473_s30 = scalar_lea.vmem %s23_s24, 256  ;;  %p478_p6 = scmp.lt.s32.totalorder %s23_s24, %s23_s24 }
  0x11   :  { %p474_p5 = scmp.ne.s32.totalorder %s23_s24, %s473_s30  ;;  %p479_p7 = scmp.lt.s32.totalorder %s473_s30, %s473_s30 }
  0x13   :  { %p480_p8 = por %p479_p7, %p478_p6 }
  0x15   :  { %p481_p9 = pnand %p480_p8, %p474_p5 }
  0x17   :  { %484 = shalt.err (!%p481_p9)
}
  0x18   :  { %28 = dma.hbm_to_vmem [thread:$0]  %s693_s0, 256, %s23_s24, [#allocation3], %s597_s26, %s597_s26, %s598_s27  }
  0x19   :  { %s599_s9 = smov [#allocation7]   ;;  %s600_s11 = smov [#allocation8]  }
  0x1a   :  { %s46_s10 = sshll.u32 %s599_s9, 4  ;;  %s58_s12 = sshll.u32 %s600_s11, 4  ;;  %s47_s10 = int_to_ptr.vmem [resolvable:$true] %s46_s10  ;;  %s59_s12 = int_to_ptr.vmem [resolvable:$true] %s58_s12 }
  0x1b   :  { %s493_s1 = scalar_lea.vmem %s47_s10, 512  ;;  %p498_p11 = scmp.lt.s32.totalorder %s47_s10, %s47_s10 }
  0x1c   :  { %p494_p10 = scmp.ne.s32.totalorder %s47_s10, %s493_s1  ;;  %p499_p12 = scmp.lt.s32.totalorder %s493_s1, %s493_s1 }
  0x1e   :  { %p500_p13 = por %p499_p12, %p498_p11 }
  0x20   :  { %p501_p0 = pnand %p500_p13, %p494_p10 }
  0x22   :  { %504 = shalt.err (!%p501_p0)
}
  0x23   :  { %52 = dma.hbm_to_vmem [thread:$0]  %s695_s2, 512, %s47_s10, [#allocation6], %s597_s26, %s597_s26, %s598_s27  }
  0x24   :  { %s513_s0 = scalar_lea.vmem %s59_s12, 512  ;;  %p518_p2 = scmp.lt.s32.totalorder %s59_s12, %s59_s12 }
  0x25   :  { %p514_p1 = scmp.ne.s32.totalorder %s59_s12, %s513_s0  ;;  %p519_p3 = scmp.lt.s32.totalorder %s513_s0, %s513_s0 }
  0x27   :  { %p520_p4 = por %p519_p3, %p518_p2 }
  0x29   :  { %p521_p5 = pnand %p520_p4, %p514_p1 }
  0x2b   :  { %524 = shalt.err (!%p521_p5)
}
  0x2c   :  { %64 = dma.hbm_to_vmem [thread:$0]  %s696_s3, 512, %s59_s12, [#allocation9], %s597_s26, %s597_s26, %s598_s27  }
  0x2d   :  { %585 = dma.done.wait [#allocation3], 256  }
  0x2e   :  { %586 = vsyncadd [#allocation3], 4294967040 }
  0x2f   :  { %587 = dma.done.wait [#allocation6], 1024  }
  0x30   :  { %588 = vsyncadd [#allocation6], 4294966272 }
  0x31   :  { %589 = dma.done.wait [#allocation9], 512  }
  0x32   :  { %590 = vsyncadd [#allocation9], 4294966784  ;;  %v82_v0 = vld [vmem:[#allocation5 + $0x18] sm:$0xff]  ;;  %v81_v1 = vld [vmem:[#allocation5 + $0x10] sm:$0xff]  ;;  %vm83_vm0 = vcmask 261120   ;;  %s601_s2 = smov [#allocation10]  }
  0x33   :  { %403 = vmatprep.subr.mxu0 %v82_v0  ;;  %v170_v2 = vld [vmem:[#allocation7 + $0x18] sm:$0xff]  ;;  %v77_v3 = vld [vmem:[#allocation2] sm:$0xff]  ;;  %v80_v4 = vld [vmem:[#allocation5 + $0x8] sm:$0xff]  ;;  %s334_s3 = sshll.u32 %s601_s2, 4  ;;  %s602_s17 = smov [#allocation11]   ;;  %s335_s3 = int_to_ptr.vmem [resolvable:$true] %s334_s3 }
  0x34   :  { %404 = vmatpush3.msra.mxu0 %v82_v0  ;;  %414 = vmatprep.subr.mxu1 %v170_v2  ;;  %v169_v5 = vld [vmem:[#allocation7 + $0x10] sm:$0xff]  ;;  %v79_v6 = vld [vmem:[#allocation5] sm:$0xff]  ;;  %v168_v7 = vld [vmem:[#allocation7 + $0x8] sm:$0xff]  ;;  %s346_s18 = sshll.u32 %s602_s17, 4  ;;  %s525_s19 = scalar_lea.vmem %s335_s3, 256  ;;  %s347_s18 = int_to_ptr.vmem [resolvable:$true] %s346_s18 }
  0x35   :  { %405 = vmatprep.subr.mxu0 %v81_v1  ;;  %415 = vmatpush3.msra.mxu1 %v170_v2  ;;  %v78_v8 = vld [vmem:[#allocation2 + $0x8] sm:$0xff]  ;;  %v167_v10 = vld [vmem:[#allocation7] sm:$0xff]  ;;  %v250_v11 = vld [vmem:[#allocation8 + $0x10] sm:$0xff]  ;;  %p526_p6 = scmp.ne.s32.totalorder %s335_s3, %s525_s19  ;;  %p530_p7 = scmp.lt.s32.totalorder %s335_s3, %s335_s3 }
  0x36   :  { %406 = vmatpush3.msra.mxu0 %v81_v1  ;;  %411 = vmatprep.mubr.msk.f32.mxu0 %vm83_vm0, %v77_v3  ;;  %v251_v9 = vld [vmem:[#allocation8 + $0x18] sm:$0xff]  ;;  %v249_v12 = vld [vmem:[#allocation8 + $0x8] sm:$0xff]  ;;  %v248_v13 = vld [vmem:[#allocation8] sm:$0xff]  ;;  %p531_p8 = scmp.lt.s32.totalorder %s525_s19, %s525_s19 }
  0x37   :  { %407 = vmatprep.subr.mxu0 %v80_v4  ;;  %416 = vmatprep.subr.mxu1 %v169_v5 }
  0x38   :  { %408 = vmatpush3.msra.mxu0 %v80_v4  ;;  %417 = vmatpush3.msra.mxu1 %v169_v5  ;;  %p532_p9 = por %p531_p8, %p530_p7 }
  0x39   :  { %409 = vmatprep.subr.mxu0 %v79_v6  ;;  %418 = vmatprep.subr.mxu1 %v168_v7 }
  0x3a   :  { %410 = vmatpush3.msra.mxu0 %v79_v6  ;;  %419 = vmatpush3.msra.mxu1 %v168_v7  ;;  %p533_p10 = pnand %p532_p9, %p526_p6 }
  0x3b   :  { %412 = vmatmul.mubr.msk.f32.vlgmr.msra.gmra.mxu0 %vm83_vm0, %v78_v8  ;;  %425 = vmatprep.subr.mxu0 %v251_v9 }
  0x3c   :  { %426 = vmatpush3.msra.mxu0 %v251_v9  ;;  %420 = vmatprep.subr.mxu1 %v167_v10 }
  0x3d   :  { %427 = vmatprep.subr.mxu0 %v250_v11  ;;  %421 = vmatpush3.msra.mxu1 %v167_v10 }
  0x3e   :  { %428 = vmatpush3.msra.mxu0 %v250_v11  ;;  %422 = vmatprep.mubr.msk.f32.mxu1 %vm83_vm0, %v77_v3 }
  0x3f   :  { %429 = vmatprep.subr.mxu0 %v249_v12  ;;  %423 = vmatmul.mubr.msk.f32.vlgmr.msra.gmra.mxu1 %vm83_vm0, %v78_v8 }
  0x40   :  { %430 = vmatpush3.msra.mxu0 %v249_v12  ;;  %433 = vmatprep.mubr.msk.f32.mxu0 %vm83_vm0, %v77_v3 }
  0x41   :  { %431 = vmatprep.subr.mxu0 %v248_v13 }
  0x42   :  { %432 = vmatpush3.msra.mxu0 %v248_v13 }
  0x43   :  { %434 = vmatmul.mubr.msk.f32.vlgmr.msra.gmra.mxu0 %vm83_vm0, %v78_v8 }
  0xfb   :  { %v413_v14 = vpop.f32.mrf.mxu0 }
  0xfc   :  { %166 = vst.msk [vmem:[#allocation10 + $0x8] sm:$0xff] %vm83_vm0, %v413_v14 }
  0xfd   :  { %v156_v15 = vpop.f32.mrf.mxu0 }
  0xfe   :  { %165 = vst.msk [vmem:[#allocation10] sm:$0xff] %vm83_vm0, %v156_v15 }
  0xff   :  { %v424_v16 = vpop.f32.mrf.mxu1 }
 0x100   :  { %536 = shalt.err (!%p533_p10)
}
 0x101   :  { %340 = dma.vmem_to_hbm [thread:$0]  %s335_s3, 256, %s697_s4, [#allocation4], %s597_s26, %s597_s26, %s598_s27   ;;  %247 = vst.msk [vmem:[#allocation11 + $0x8] sm:$0xff] %vm83_vm0, %v424_v16  ;;  %v237_v17 = vpop.f32.mrf.mxu1 }
 0x102   :  { %s603_s22 = smov [#allocation13]   ;;  %246 = vst.msk [vmem:[#allocation11] sm:$0xff] %vm83_vm0, %v237_v17  ;;  %s545_s24 = scalar_lea.vmem %s347_s18, 256 }
 0x103   :  { %s358_s23 = sshll.u32 %s603_s22, 4  ;;  %v435_v18 = vpop.f32.mrf.mxu0  ;;  %p546_p11 = scmp.ne.s32.totalorder %s347_s18, %s545_s24  ;;  %s359_s23 = int_to_ptr.vmem [resolvable:$true] %s358_s23 }
 0x104   :  { %p550_p12 = scmp.lt.s32.totalorder %s347_s18, %s347_s18  ;;  %p551_p13 = scmp.lt.s32.totalorder %s545_s24, %s545_s24 }
 0x106   :  { %p552_p0 = por %p551_p13, %p550_p12 }
 0x108   :  { %p553_p1 = pnand %p552_p0, %p546_p11 }
 0x10a   :  { %556 = shalt.err (!%p553_p1)
}
 0x10b   :  { %352 = dma.vmem_to_hbm [thread:$0]  %s347_s18, 256, %s698_s5, [#allocation12], %s597_s26, %s597_s26, %s598_s27   ;;  %328 = vst.msk [vmem:[#allocation13 + $0x8] sm:$0xff] %vm83_vm0, %v435_v18  ;;  %v318_v19 = vpop.f32.mrf.mxu0 }
 0x10c   :  { %327 = vst.msk [vmem:[#allocation13] sm:$0xff] %vm83_vm0, %v318_v19  ;;  %s565_s28 = scalar_lea.vmem %s359_s23, 256  ;;  %p570_p3 = scmp.lt.s32.totalorder %s359_s23, %s359_s23 }
 0x10d   :  { %p566_p2 = scmp.ne.s32.totalorder %s359_s23, %s565_s28  ;;  %p571_p4 = scmp.lt.s32.totalorder %s565_s28, %s565_s28 }
 0x10f   :  { %p572_p5 = por %p571_p4, %p570_p3 }
 0x111   :  { %p573_p6 = pnand %p572_p5, %p566_p2 }
 0x113   :  { %576 = shalt.err (!%p573_p6)
}
 0x114   :  { %364 = dma.vmem_to_hbm [thread:$0]  %s359_s23, 256, %s699_s6, [#allocation12], %s597_s26, %s597_s26, %s598_s27  }
 0x115   :  { %591 = dma.done.wait [#allocation4], 256  }
 0x116   :  { %592 = vsyncadd [#allocation4], 4294967040 }
 0x117   :  { %593 = dma.done.wait [#allocation12], 512  }
 0x118   :  { %594 = vsyncadd [#allocation12], 4294966784 }
 0x119   :  { %374 = vsyncpa [#allocation3], 1 }
 0x11a   :  { %375 = vsyncpa [#allocation6], 1 }
 0x11b   :  { %376 = vsyncpa [#allocation9], 1 }
 0x11c   :  { %377 = vsyncpa [#allocation4], 1 }
 0x11d   :  { %378 = vsyncpa [#allocation12], 1 }

</bundles_post_ra>
